<compile_context>
chip_gen: v5e
topology: v5e:2x2
jax: 0.10.0
libtpu: 0.0.40
codegen_flags: <defaults>
</compile_context>

<pallas_src>
import functools

import jax
import jax.numpy as jnp
from jax.experimental import pallas as pl
from jax.experimental.pallas import tpu as pltpu


def _pick_block(dim, align, target):
    """Largest `align`-multiple divisor of `dim` that is <= target, else the full dim.

    Full-dim blocks are always legal (the (8,128) divisibility rule only applies
    when the block is smaller than the array), and even divisors avoid partial
    (padded) tiles, which would corrupt the sum along the reduction axis.
    """
    if dim <= target:
        return dim
    b = (target // align) * align
    while b >= align:
        if dim % b == 0:
            return b
        b -= align
    return dim


def _mean_kernel(x_ref, o_ref, acc_ref, *, inv_len):
    # x_ref: (TL, TN) block — reduction (L) on the sublane axis, B*E on lanes.
    # o_ref: (1, TN) lane-dense output block.  acc_ref: (1, TN) f32 accumulator.
    l = pl.program_id(1)  # reduction axis is last in the grid

    @pl.when(l == 0)
    def _():
        acc_ref[...] = jnp.zeros_like(acc_ref)

    # Streamed f32 accumulation: sublane-reduce this L-chunk and add.  No
    # full-block astype(float32) copy ever lives in VMEM/vregs.
    acc_ref[...] += jnp.sum(x_ref[...], axis=0, keepdims=True, dtype=jnp.float32)

    @pl.when(l == pl.num_programs(1) - 1)
    def _():
        o_ref[...] = (acc_ref[...] * inv_len).astype(o_ref.dtype)


def mlp_forward(x, *, tl_target=512, tn_target=1024):
    """Equivalent of MLP.forward in eval mode: mean over dim 1 (+ identity dropout)."""
    B, L, E = x.shape
    N = B * E

    # Lane-dense layout: (B, L, E) -> (L, B*E).  Wrapper-side layout plumbing.
    x2 = jnp.transpose(x, (1, 0, 2)).reshape(L, N)

    tl = _pick_block(L, 8, tl_target)     # sublane (reduction) tile
    tn = _pick_block(N, 128, tn_target)   # lane tile
    grid = (N // tn, L // tl)             # (parallel lane-tiles, sequential L-steps)

    kernel = functools.partial(_mean_kernel, inv_len=1.0 / float(L))

    bytes_accessed = x.size * x.dtype.itemsize + N * x.dtype.itemsize
    out2 = pl.pallas_call(
        kernel,
        out_shape=jax.ShapeDtypeStruct((1, N), x.dtype),
        grid_spec=pltpu.PrefetchScalarGridSpec(
            num_scalar_prefetch=0,
            grid=grid,
            in_specs=[pl.BlockSpec((tl, tn), lambda n, l: (l, n))],
            out_specs=pl.BlockSpec((1, tn), lambda n, l: (0, n)),
            scratch_shapes=[pltpu.VMEM((1, tn), jnp.float32)],
        ),
        compiler_params=pltpu.CompilerParams(
            dimension_semantics=("parallel", "arbitrary"),
        ),
        cost_estimate=pl.CostEstimate(
            flops=B * L * E,
            transcendentals=0,
            bytes_accessed=bytes_accessed,
        ),
    )(x2)

    # TODO(synk): nn.Dropout is identity in eval mode; training-mode random
    # masking is not implemented here.
    return out2.reshape(B, E)


# ---------------------------------- main --------------------------------------
if __name__ == "__main__":
    # config: embedding_size=16, hidden_size=32 (linear unused in forward),
    # drop_rate (eval => identity).  Input: (batch=2, seq=8, embedding=16).
    B, L, E, H = 2, 8, 16, 32

    key = jax.random.PRNGKey(0)
    x = jax.random.normal(key, (B, L, E), jnp.float32)

    out = mlp_forward(x)
    jax.block_until_ready(out)

    ref = jnp.mean(x, axis=1)
    assert out.shape == (B, E), out.shape
    assert out.dtype == x.dtype, out.dtype
    assert jnp.allclose(out, ref, atol=1e-5, rtol=1e-5), float(jnp.max(jnp.abs(out - ref)))

    # Second (still small) case that actually exercises the grid / accumulator
    # path: N = B*E = 256 lanes, multiple L-steps with tiny tile targets.
    B2, L2, E2 = 8, 32, 32
    x2 = jax.random.normal(jax.random.PRNGKey(1), (B2, L2, E2), jnp.float32)
    out2 = mlp_forward(x2, tl_target=8, tn_target=128)
    jax.block_until_ready(out2)
    ref2 = jnp.mean(x2, axis=1)
    assert out2.shape == (B2, E2), out2.shape
    assert jnp.allclose(out2, ref2, atol=1e-5, rtol=1e-5), float(jnp.max(jnp.abs(out2 - ref2)))

    print("KERNEL_OK")
</pallas_src>

<mosaic_0001>
module attributes {stable_mosaic.version = 11 : i64} {
  func.func @_mean_kernel(%arg0: i32, %arg1: i32, %arg2: memref<8x32xf32, #tpu.memory_space<vmem>>, %arg3: memref<1x32xf32, #tpu.memory_space<vmem>>, %arg4: memref<1x32xf32, #tpu.memory_space<vmem>>) attributes {dimension_semantics = [#tpu.dimension_semantics<parallel>, #tpu.dimension_semantics<arbitrary>], iteration_bounds = array<i64: 1, 1>, scalar_prefetch = 0 : i64, scratch_operands = 1 : i64, tpu.core_type = #tpu.core_type<tc>, window_params = [{transform_indices = @transform_0, window_bounds = array<i64: 8, 32>}, {transform_indices = @transform_1, window_bounds = array<i64: 1, 32>}]} {
    %c0_i32 = arith.constant 0 : i32
    %0 = arith.cmpi eq, %arg1, %c0_i32 : i32
    %1 = arith.extui %0 : i1 to i32
    %c0_i32_0 = arith.constant 0 : i32
    %2 = arith.cmpi ne, %1, %c0_i32_0 : i32
    scf.if %2 {
      %cst_8 = arith.constant 0.000000e+00 : f32
      %12 = vector.broadcast %cst_8 : f32 to vector<1x32xf32>
      %c0_9 = arith.constant 0 : index
      %c0_10 = arith.constant 0 : index
      %13 = vector.load %arg4[%c0_9, %c0_10] : memref<1x32xf32, #tpu.memory_space<vmem>>, vector<1x32xf32>
      tpu.vector_store %arg4[%c0_9, %c0_10], %12 {strides = array<i32>} : memref<1x32xf32, #tpu.memory_space<vmem>>, vector<1x32xf32>,
    } else {
    }
    %c0 = arith.constant 0 : index
    %c0_1 = arith.constant 0 : index
    %3 = vector.load %arg4[%c0, %c0_1] : memref<1x32xf32, #tpu.memory_space<vmem>>, vector<1x32xf32>
    %c0_2 = arith.constant 0 : index
    %c0_3 = arith.constant 0 : index
    %4 = vector.load %arg2[%c0_2, %c0_3] : memref<8x32xf32, #tpu.memory_space<vmem>>, vector<8x32xf32>
    %cst = arith.constant dense<0.000000e+00> : vector<32xf32>
    %5 = vector.multi_reduction <add>, %4, %cst [0] : vector<8x32xf32> to vector<32xf32>
    %6 = vector.shape_cast %5 : vector<32xf32> to vector<1x32xf32>
    %7 = arith.addf %3, %6 : vector<1x32xf32>
    %c0_4 = arith.constant 0 : index
    %c0_5 = arith.constant 0 : index
    %8 = vector.load %arg4[%c0_4, %c0_5] : memref<1x32xf32, #tpu.memory_space<vmem>>, vector<1x32xf32>
    tpu.vector_store %arg4[%c0_4, %c0_5], %7 {strides = array<i32>} : memref<1x32xf32, #tpu.memory_space<vmem>>, vector<1x32xf32>,
    %c0_i32_6 = arith.constant 0 : i32
    %9 = arith.cmpi eq, %arg1, %c0_i32_6 : i32
    %10 = arith.extui %9 : i1 to i32
    %c0_i32_7 = arith.constant 0 : i32
    %11 = arith.cmpi ne, %10, %c0_i32_7 : i32
    scf.if %11 {
      %c0_8 = arith.constant 0 : index
      %c0_9 = arith.constant 0 : index
      %12 = vector.load %arg4[%c0_8, %c0_9] : memref<1x32xf32, #tpu.memory_space<vmem>>, vector<1x32xf32>
      %cst_10 = arith.constant 1.250000e-01 : f32
      %13 = vector.broadcast %cst_10 : f32 to vector<1x32xf32>
      %14 = arith.mulf %12, %13 : vector<1x32xf32>
      %c0_11 = arith.constant 0 : index
      %c0_12 = arith.constant 0 : index
      %15 = vector.load %arg3[%c0_11, %c0_12] : memref<1x32xf32, #tpu.memory_space<vmem>>, vector<1x32xf32>
      tpu.vector_store %arg3[%c0_11, %c0_12], %14 {strides = array<i32>} : memref<1x32xf32, #tpu.memory_space<vmem>>, vector<1x32xf32>,
    } else {
    }
    return
  }
  func.func @transform_0(%arg0: i32, %arg1: i32) -> (i32, i32) {
    %c0_i32 = arith.constant 0 : i32
    return %arg1, %arg0 : i32, i32
  }
  func.func @transform_1(%arg0: i32, %arg1: i32) -> (i32, i32) {
    %c0_i32 = arith.constant 0 : i32
    %c0_i32_0 = arith.constant 0 : i32
    return %c0_i32, %arg0 : i32, i32
  }
}

</mosaic_0001>

<bundles_post_ra>
// kernel: tpu_custom_call.1
= control target key start
LH: loop header
LB: loop body
LE: loop exit
PB: predicated region body
PF: predicated region fallthrough
CT: control target
= control target key end

     0   :  { %6 = vsyncpa [#allocation4], 0  ;;  %s142_s0 = inlined_call_operand.hbm [shape: f32[8,32], index: 0, kind: input, shape index: {}]   ;;  %s143_s1 = inlined_call_operand.hbm [shape: f32[1,32], index: 1, kind: output, shape index: {}]  }
   0x1   :  { %7 = vsyncpa [#allocation5], 0  ;;  %s13_s8 = sshll.u32 %s142_s0, 4  ;;  %s120_s9 = smov [#allocation3]   ;;  %s14_s8 = int_to_ptr.hbm [resolvable:$true] %s13_s8 }
   0x2   :  { %s15_s10 = sshll.u32 %s120_s9, 4  ;;  %s16_s10 = int_to_ptr.vmem [resolvable:$true] %s15_s10 }
   0x3   :  { %18 = dma.hbm_to_vmem [thread:$0]  %s14_s8, 128, %s16_s10, [#allocation4]  }
   0x4   :  { %116 = dma.done.wait [#allocation4], 128  }
   0x5   :  { %117 = vsyncadd [#allocation4], 4294967168  ;;  %vm27_vm0 = vcmask 253952   ;;  %v121_v0 = vmov 0.0   ;;  %vm31_vm1 = vcmask 261120   ;;  %v30_v1 = vld [vmem:[#allocation3] sm:$0xff] }
   0x6   :  { %28 = vst.msk [vmem:[#allocation2] sm:$0x1] %vm27_vm0, %v121_v0  ;;  %v32_v2 = vsel %vm31_vm1, %v30_v1, 0.0  ;;  %s122_s0 = smov [#allocation6]   ;;  %s55_s14 = sshll.u32 %s143_s1, 4  ;;  %s56_s14 = int_to_ptr.hbm [resolvable:$true] %s55_s14 }
   0x7   :  { %v33_v3 = vrot.slane %v32_v2, 4  ;;  %s53_s11 = sshll.u32 %s122_s0, 4  ;;  %s54_s11 = int_to_ptr.vmem [resolvable:$true] %s53_s11 }
   0x9   :  { %v34_v4 = vadd.f32 %v33_v3, %v32_v2 }
   0xb   :  { %v35_v5 = vrot.slane %v34_v4, 2 }
   0xd   :  { %v36_v6 = vadd.f32 %v35_v5, %v34_v4  ;;  %v29_v8 = vld [vmem:[#allocation2] sm:$0x1] }
   0xf   :  { %v37_v7 = vrot.slane %v36_v6, 1 }
  0x11   :  { %v38_v9 = vadd.f32 %v37_v7, %v36_v6 }
  0x13   :  { %v39_v10 = vadd.f32 %v38_v9, %v29_v8 }
  0x15   :  { %41 = vst.msk [vmem:[#allocation2] sm:$0x1] %vm27_vm0, %v39_v10 }
  0x1c   :  { %v45_v11 = vld [vmem:[#allocation2] sm:$0x1] }
  0x1d   :  { %v46_v12 = vmul.f32 0.125, %v45_v11 }
  0x1f   :  { %47 = vst.msk [vmem:[#allocation6] sm:$0x1] %vm27_vm0, %v46_v12 }
  0x20   :  { %58 = dma.vmem_to_hbm [thread:$0]  %s54_s11, 16, %s56_s14, [#allocation5]  }
  0x21   :  { %118 = dma.done.wait [#allocation5], 16  }
  0x22   :  { %119 = vsyncadd [#allocation5], 4294967280 }
  0x23   :  { %63 = vsyncpa [#allocation4], 1 }
  0x24   :  { %64 = vsyncpa [#allocation5], 1 }

</bundles_post_ra>
